<compile_context>
chip_gen: v6e
topology: v6e:2x2x1
jax: 0.10.0
libtpu: 0.0.40
codegen_flags: <defaults>
</compile_context>

<pallas_src>
import jax
import jax.numpy as jnp
from jax.experimental import pallas as pl
from jax.experimental.pallas import tpu as pltpu


OUT_PAD = 128  # lane-dense output width; the true scalar output is column 0


# ---------------------------------------------------------------------------
# Pallas kernel: fused gather + input build + 4-layer MLP
# ---------------------------------------------------------------------------
def _odefunc_kernel(idx_ref,              # SMEM (1,) int32 scalar prefetch (used by index_map)
                    x_ref,                # VMEM (B, 1)      state x
                    cur_ref,              # VMEM (1, B, 1)   current_profile[:, time_idx, :]
                    t_ref,                # SMEM (1,) f32    scalar time t
                    w1_ref, b1_ref,       # (3,128),  (1,128)
                    w2_ref, b2_ref,       # (128,128),(1,128)
                    w3_ref, b3_ref,       # (128,64), (1,64)
                    w4_ref, b4_ref,       # (64,128) zero-padded, (1,128) zero-padded
                    o_ref):               # VMEM (B, 128) lane-dense output
    del idx_ref  # consumed by cur_ref's index_map

    x = x_ref[...]                        # (B, 1)
    cur = cur_ref[0]                      # (B, 1)
    t = t_ref[0]                          # scalar f32
    w1 = w1_ref[...]                      # (3, 128)

    # Layer 1: cat([x, cur, t]) @ W1 + b1 expressed as 3 broadcast mult-adds
    # (pure VPU work, no concat, no K=3 MXU pass).
    h = x * w1[0:1] + cur * w1[1:2] + t * w1[2:3] + b1_ref[...]
    h = jnp.maximum(h, 0.0)

    h = jnp.dot(h, w2_ref[...], preferred_element_type=jnp.float32) + b2_ref[...]
    h = jnp.maximum(h, 0.0)
    h = jnp.dot(h, w3_ref[...], preferred_element_type=jnp.float32) + b3_ref[...]
    h = jnp.maximum(h, 0.0)
    out = jnp.dot(h, w4_ref[...], preferred_element_type=jnp.float32) + b4_ref[...]

    o_ref[...] = out.astype(o_ref.dtype)  # unmasked 128-lane store; col 0 is the result


# ---------------------------------------------------------------------------
# Wrapper: mirrors ODEFunc + set_current_profile / set_time_tensor
# ---------------------------------------------------------------------------
def make_odefunc(params, current_profile, time_tensor):
    """Returns a jitted forward(t, x) -> (B, 1)."""
    (w1, b1), (w2, b2), (w3, b3), (w4, b4) = params

    # One-time lane-dense padding of the last layer (free: outside the per-step path).
    w4p = jnp.zeros((w4.shape[0], OUT_PAD), jnp.float32).at[:, : w4.shape[1]].set(w4)
    b4p = jnp.zeros((1, OUT_PAD), jnp.float32).at[:, : b4.shape[1]].set(b4)
    weights = (w1, b1, w2, b2, w3, b3, w4p, b4p)

    # One-time transpose (B,S,1) -> (S,B,1): the scalar-prefetched time index picks a
    # single (1,B,1) slice via the index_map, so only B floats of the profile are
    # DMA'd per evaluation and the block's last two dims stay full-array.
    cp_t = jnp.transpose(jnp.asarray(current_profile, jnp.float32), (1, 0, 2))
    time_tensor = jnp.asarray(time_tensor, jnp.float32)
    B = current_profile.shape[0]

    def _full(shape):
        return pl.BlockSpec(shape, lambda i, idx, _n=len(shape): (0,) * _n)

    grid_spec = pltpu.PrefetchScalarGridSpec(
        num_scalar_prefetch=1,            # time_idx (SMEM), feeds index_maps
        grid=(1,),
        in_specs=[
            _full((B, 1)),                                            # x
            pl.BlockSpec((1, B, 1), lambda i, idx: (idx[0], 0, 0)),   # profile slice at t
            pl.BlockSpec(memory_space=pltpu.MemorySpace.SMEM),        # scalar t
            _full(w1.shape), _full(b1.shape),
            _full(w2.shape), _full(b2.shape),
            _full(w3.shape), _full(b3.shape),
            _full(w4p.shape), _full(b4p.shape),
        ],
        out_specs=pl.BlockSpec((B, OUT_PAD), lambda i, idx: (0, 0)),
    )

    call = pl.pallas_call(
        _odefunc_kernel,
        out_shape=jax.ShapeDtypeStruct((B, OUT_PAD), jnp.float32),
        grid_spec=grid_spec,
        compiler_params=pltpu.CompilerParams(
            dimension_semantics=("arbitrary",)),
    )

    # TODO(synk): keeping weights resident across ODE solver steps (grid over steps /
    # in-kernel integration loop) needs the solver loop inside one pallas_call, which
    # is outside this module's single-evaluation forward().
    @jax.jit
    def forward(t, x):
        t = jnp.asarray(t, jnp.float32)
        # Explicit argmin (matches torch.argmin first-index tie-break, works for
        # non-uniform time grids); one tiny op fused into this jit.
        time_idx = jnp.argmin(jnp.abs(time_tensor - t)).astype(jnp.int32)
        out = call(time_idx.reshape(1), x.astype(jnp.float32), cp_t,
                   t.reshape(1), *weights)
        return out[:, :1]

    return forward


# ---------------------------------------------------------------------------
# Pure-JAX reference (for correctness check) and deterministic init
# ---------------------------------------------------------------------------
def _odefunc_reference(t, x, current_profile, time_tensor, params):
    (w1, b1), (w2, b2), (w3, b3), (w4, b4) = params
    idx = jnp.argmin(jnp.abs(time_tensor - t))
    cur = jax.lax.dynamic_index_in_dim(current_profile, idx, axis=1, keepdims=False)
    B = current_profile.shape[0]
    inp = jnp.concatenate([x, cur, jnp.full((B, 1), t, jnp.float32)], axis=-1)
    hp = jax.lax.Precision.HIGHEST
    h = jnp.maximum(jnp.dot(inp, w1, precision=hp) + b1, 0.0)
    h = jnp.maximum(jnp.dot(h, w2, precision=hp) + b2, 0.0)
    h = jnp.maximum(jnp.dot(h, w3, precision=hp) + b3, 0.0)
    return jnp.dot(h, w4, precision=hp) + b4


def init_params(key):
    dims = [(3, 128), (128, 128), (128, 64), (64, 1)]
    params = []
    for (fan_in, fan_out) in dims:
        key, kw, kb = jax.random.split(key, 3)
        bound = 1.0 / jnp.sqrt(jnp.float32(fan_in))
        w = jax.random.uniform(kw, (fan_in, fan_out), jnp.float32, -bound, bound)
        b = jax.random.uniform(kb, (1, fan_out), jnp.float32, -bound, bound)
        params.append((w, b))
    return params


if __name__ == "__main__":
    key = jax.random.PRNGKey(0)
    k_par, k_x, k_cur = jax.random.split(key, 3)

    batch, seq_len, state_dim = 2, 8, 1

    params = init_params(k_par)
    x = jax.random.normal(k_x, (batch, state_dim), jnp.float32)
    current_profile = jax.random.normal(k_cur, (batch, seq_len, 1), jnp.float32)
    time_tensor = jnp.linspace(0.0, 1.0, seq_len, dtype=jnp.float32)
    t = jnp.float32(0.37)

    forward = make_odefunc(params, current_profile, time_tensor)
    out = jax.block_until_ready(forward(t, x))

    ref = _odefunc_reference(t, x, current_profile, time_tensor, params)
    assert out.shape == (batch, 1)
    assert bool(jnp.all(jnp.isfinite(out)))
    assert bool(jnp.allclose(out, ref, atol=1e-3, rtol=1e-3))
    print("KERNEL_OK")
</pallas_src>

<mosaic_0001>
module attributes {stable_mosaic.version = 11 : i64} {
  func.func @_odefunc_kernel(%arg0: i32, %arg1: memref<1xi32, #tpu.memory_space<smem>>, %arg2: memref<2x1xf32, #tpu.memory_space<vmem>>, %arg3: memref<1x2x1xf32, #tpu.memory_space<vmem>>, %arg4: memref<1xf32, #tpu.memory_space<smem>>, %arg5: memref<3x128xf32, #tpu.memory_space<vmem>>, %arg6: memref<1x128xf32, #tpu.memory_space<vmem>>, %arg7: memref<128x128xf32, #tpu.memory_space<vmem>>, %arg8: memref<1x128xf32, #tpu.memory_space<vmem>>, %arg9: memref<128x64xf32, #tpu.memory_space<vmem>>, %arg10: memref<1x64xf32, #tpu.memory_space<vmem>>, %arg11: memref<64x128xf32, #tpu.memory_space<vmem>>, %arg12: memref<1x128xf32, #tpu.memory_space<vmem>>, %arg13: memref<2x128xf32, #tpu.memory_space<vmem>>) attributes {dimension_semantics = [#tpu.dimension_semantics<arbitrary>], iteration_bounds = array<i64: 1>, scalar_prefetch = 1 : i64, scratch_operands = 0 : i64, tpu.core_type = #tpu.core_type<tc>, window_params = [{pipeline_mode = #tpu.pipeline_mode<synchronous>, transform_indices = @transform_0, window_bounds = array<i64: 2, 1>}, {transform_indices = @transform_1, window_bounds = array<i64: 1, 2, 1>}, {transform_indices = @transform_2, window_bounds = array<i64: 1>}, {pipeline_mode = #tpu.pipeline_mode<synchronous>, transform_indices = @transform_3, window_bounds = array<i64: 3, 128>}, {pipeline_mode = #tpu.pipeline_mode<synchronous>, transform_indices = @transform_4, window_bounds = array<i64: 1, 128>}, {pipeline_mode = #tpu.pipeline_mode<synchronous>, transform_indices = @transform_5, window_bounds = array<i64: 128, 128>}, {pipeline_mode = #tpu.pipeline_mode<synchronous>, transform_indices = @transform_6, window_bounds = array<i64: 1, 128>}, {pipeline_mode = #tpu.pipeline_mode<synchronous>, transform_indices = @transform_7, window_bounds = array<i64: 128, 64>}, {pipeline_mode = #tpu.pipeline_mode<synchronous>, transform_indices = @transform_8, window_bounds = array<i64: 1, 64>}, {pipeline_mode = #tpu.pipeline_mode<synchronous>, transform_indices = @transform_9, window_bounds = array<i64: 64, 128>}, {pipeline_mode = #tpu.pipeline_mode<synchronous>, transform_indices = @transform_10, window_bounds = array<i64: 1, 128>}, {pipeline_mode = #tpu.pipeline_mode<synchronous>, transform_indices = @transform_11, window_bounds = array<i64: 2, 128>}]} {
    %c0 = arith.constant 0 : index
    %c0_0 = arith.constant 0 : index
    %0 = vector.load %arg2[%c0, %c0_0] : memref<2x1xf32, #tpu.memory_space<vmem>>, vector<2x1xf32>
    %c0_1 = arith.constant 0 : index
    %c0_2 = arith.constant 0 : index
    %c0_3 = arith.constant 0 : index
    %1 = vector.load %arg3[%c0_1, %c0_2, %c0_3] : memref<1x2x1xf32, #tpu.memory_space<vmem>>, vector<1x2x1xf32>
    %2 = vector.shape_cast %1 : vector<1x2x1xf32> to vector<2x1xf32>
    %c0_4 = arith.constant 0 : index
    %3 = memref.load %arg4[%c0_4] : memref<1xf32, #tpu.memory_space<smem>>
    %c0_5 = arith.constant 0 : index
    %c0_6 = arith.constant 0 : index
    %4 = vector.load %arg5[%c0_5, %c0_6] : memref<3x128xf32, #tpu.memory_space<vmem>>, vector<3x128xf32>
    %5 = vector.extract_strided_slice %4 {offsets = [0, 0], sizes = [1, 128], strides = [1, 1]} : vector<3x128xf32> to vector<1x128xf32>
    %6 = vector.broadcast %0 : vector<2x1xf32> to vector<2x128xf32>
    %7 = vector.broadcast %5 : vector<1x128xf32> to vector<2x128xf32>
    %8 = arith.mulf %6, %7 : vector<2x128xf32>
    %9 = vector.extract_strided_slice %4 {offsets = [1, 0], sizes = [1, 128], strides = [1, 1]} : vector<3x128xf32> to vector<1x128xf32>
    %10 = vector.broadcast %2 : vector<2x1xf32> to vector<2x128xf32>
    %11 = vector.broadcast %9 : vector<1x128xf32> to vector<2x128xf32>
    %12 = arith.mulf %10, %11 : vector<2x128xf32>
    %13 = arith.addf %8, %12 : vector<2x128xf32>
    %14 = vector.extract_strided_slice %4 {offsets = [2, 0], sizes = [1, 128], strides = [1, 1]} : vector<3x128xf32> to vector<1x128xf32>
    %15 = vector.broadcast %3 : f32 to vector<1x128xf32>
    %16 = arith.mulf %15, %14 : vector<1x128xf32>
    %17 = vector.broadcast %16 : vector<1x128xf32> to vector<2x128xf32>
    %18 = arith.addf %13, %17 : vector<2x128xf32>
    %c0_7 = arith.constant 0 : index
    %c0_8 = arith.constant 0 : index
    %19 = vector.load %arg6[%c0_7, %c0_8] : memref<1x128xf32, #tpu.memory_space<vmem>>, vector<1x128xf32>
    %20 = vector.broadcast %19 : vector<1x128xf32> to vector<2x128xf32>
    %21 = arith.addf %18, %20 : vector<2x128xf32>
    %cst = arith.constant 0.000000e+00 : f32
    %22 = vector.broadcast %cst : f32 to vector<2x128xf32>
    %23 = arith.maximumf %21, %22 : vector<2x128xf32>
    %c0_9 = arith.constant 0 : index
    %c0_10 = arith.constant 0 : index
    %24 = vector.load %arg7[%c0_9, %c0_10] : memref<128x128xf32, #tpu.memory_space<vmem>>, vector<128x128xf32>
    %cst_11 = arith.constant dense<0.000000e+00> : vector<2x128xf32>
    %25 = tpu.matmul %23, %24, %cst_11 {dimension_numbers = #tpu.dot_dimension_numbers<[1], [0], [0], [1], [0, 0, 1, 1], [], []>} : vector<2x128xf32>, vector<128x128xf32>, vector<2x128xf32> -> vector<2x128xf32>
    %c0_12 = arith.constant 0 : index
    %c0_13 = arith.constant 0 : index
    %26 = vector.load %arg8[%c0_12, %c0_13] : memref<1x128xf32, #tpu.memory_space<vmem>>, vector<1x128xf32>
    %27 = vector.broadcast %26 : vector<1x128xf32> to vector<2x128xf32>
    %28 = arith.addf %25, %27 : vector<2x128xf32>
    %cst_14 = arith.constant 0.000000e+00 : f32
    %29 = vector.broadcast %cst_14 : f32 to vector<2x128xf32>
    %30 = arith.maximumf %28, %29 : vector<2x128xf32>
    %c0_15 = arith.constant 0 : index
    %c0_16 = arith.constant 0 : index
    %31 = vector.load %arg9[%c0_15, %c0_16] : memref<128x64xf32, #tpu.memory_space<vmem>>, vector<128x64xf32>
    %cst_17 = arith.constant dense<0.000000e+00> : vector<2x64xf32>
    %32 = tpu.matmul %30, %31, %cst_17 {dimension_numbers = #tpu.dot_dimension_numbers<[1], [0], [0], [1], [0, 0, 1, 1], [], []>} : vector<2x128xf32>, vector<128x64xf32>, vector<2x64xf32> -> vector<2x64xf32>
    %c0_18 = arith.constant 0 : index
    %c0_19 = arith.constant 0 : index
    %33 = vector.load %arg10[%c0_18, %c0_19] : memref<1x64xf32, #tpu.memory_space<vmem>>, vector<1x64xf32>
    %34 = vector.broadcast %33 : vector<1x64xf32> to vector<2x64xf32>
    %35 = arith.addf %32, %34 : vector<2x64xf32>
    %cst_20 = arith.constant 0.000000e+00 : f32
    %36 = vector.broadcast %cst_20 : f32 to vector<2x64xf32>
    %37 = arith.maximumf %35, %36 : vector<2x64xf32>
    %c0_21 = arith.constant 0 : index
    %c0_22 = arith.constant 0 : index
    %38 = vector.load %arg11[%c0_21, %c0_22] : memref<64x128xf32, #tpu.memory_space<vmem>>, vector<64x128xf32>
    %cst_23 = arith.constant dense<0.000000e+00> : vector<2x128xf32>
    %39 = tpu.matmul %37, %38, %cst_23 {dimension_numbers = #tpu.dot_dimension_numbers<[1], [0], [0], [1], [0, 0, 1, 1], [], []>} : vector<2x64xf32>, vector<64x128xf32>, vector<2x128xf32> -> vector<2x128xf32>
    %c0_24 = arith.constant 0 : index
    %c0_25 = arith.constant 0 : index
    %40 = vector.load %arg12[%c0_24, %c0_25] : memref<1x128xf32, #tpu.memory_space<vmem>>, vector<1x128xf32>
    %41 = vector.broadcast %40 : vector<1x128xf32> to vector<2x128xf32>
    %42 = arith.addf %39, %41 : vector<2x128xf32>
    %c0_26 = arith.constant 0 : index
    %c0_27 = arith.constant 0 : index
    %43 = vector.load %arg13[%c0_26, %c0_27] : memref<2x128xf32, #tpu.memory_space<vmem>>, vector<2x128xf32>
    tpu.vector_store %arg13[%c0_26, %c0_27], %42 {strides = array<i32>} : memref<2x128xf32, #tpu.memory_space<vmem>>, vector<2x128xf32>,
    return
  }
  func.func @transform_0(%arg0: i32, %arg1: memref<1xi32, #tpu.memory_space<smem>>) -> (i32, i32) {
    %c0_i32 = arith.constant 0 : i32
    %c0_i32_0 = arith.constant 0 : i32
    %c0_i32_1 = arith.constant 0 : i32
    return %c0_i32, %c0_i32_0 : i32, i32
  }
  func.func @transform_1(%arg0: i32, %arg1: memref<1xi32, #tpu.memory_space<smem>>) -> (i32, i32, i32) {
    %c0 = arith.constant 0 : index
    %0 = memref.load %arg1[%c0] : memref<1xi32, #tpu.memory_space<smem>>
    %c0_i32 = arith.constant 0 : i32
    %c0_i32_0 = arith.constant 0 : i32
    %c0_i32_1 = arith.constant 0 : i32
    return %0, %c0_i32, %c0_i32_0 : i32, i32, i32
  }
  func.func @transform_2(%arg0: i32, %arg1: memref<1xi32, #tpu.memory_space<smem>>) -> i32 {
    %c0_i32 = arith.constant 0 : i32
    %c0_i32_0 = arith.constant 0 : i32
    return %c0_i32 : i32
  }
  func.func @transform_3(%arg0: i32, %arg1: memref<1xi32, #tpu.memory_space<smem>>) -> (i32, i32) {
    %c0_i32 = arith.constant 0 : i32
    %c0_i32_0 = arith.constant 0 : i32
    %c0_i32_1 = arith.constant 0 : i32
    return %c0_i32, %c0_i32_0 : i32, i32
  }
  func.func @transform_4(%arg0: i32, %arg1: memref<1xi32, #tpu.memory_space<smem>>) -> (i32, i32) {
    %c0_i32 = arith.constant 0 : i32
    %c0_i32_0 = arith.constant 0 : i32
    %c0_i32_1 = arith.constant 0 : i32
    return %c0_i32, %c0_i32_0 : i32, i32
  }
  func.func @transform_5(%arg0: i32, %arg1: memref<1xi32, #tpu.memory_space<smem>>) -> (i32, i32) {
    %c0_i32 = arith.constant 0 : i32
    %c0_i32_0 = arith.constant 0 : i32
    %c0_i32_1 = arith.constant 0 : i32
    return %c0_i32, %c0_i32_0 : i32, i32
  }
  func.func @transform_6(%arg0: i32, %arg1: memref<1xi32, #tpu.memory_space<smem>>) -> (i32, i32) {
    %c0_i32 = arith.constant 0 : i32
    %c0_i32_0 = arith.constant 0 : i32
    %c0_i32_1 = arith.constant 0 : i32
    return %c0_i32, %c0_i32_0 : i32, i32
  }
  func.func @transform_7(%arg0: i32, %arg1: memref<1xi32, #tpu.memory_space<smem>>) -> (i32, i32) {
    %c0_i32 = arith.constant 0 : i32
    %c0_i32_0 = arith.constant 0 : i32
    %c0_i32_1 = arith.constant 0 : i32
    return %c0_i32, %c0_i32_0 : i32, i32
  }
  func.func @transform_8(%arg0: i32, %arg1: memref<1xi32, #tpu.memory_space<smem>>) -> (i32, i32) {
    %c0_i32 = arith.constant 0 : i32
    %c0_i32_0 = arith.constant 0 : i32
    %c0_i32_1 = arith.constant 0 : i32
    return %c0_i32, %c0_i32_0 : i32, i32
  }
  func.func @transform_9(%arg0: i32, %arg1: memref<1xi32, #tpu.memory_space<smem>>) -> (i32, i32) {
    %c0_i32 = arith.constant 0 : i32
    %c0_i32_0 = arith.constant 0 : i32
    %c0_i32_1 = arith.constant 0 : i32
    return %c0_i32, %c0_i32_0 : i32, i32
  }
  func.func @transform_10(%arg0: i32, %arg1: memref<1xi32, #tpu.memory_space<smem>>) -> (i32, i32) {
    %c0_i32 = arith.constant 0 : i32
    %c0_i32_0 = arith.constant 0 : i32
    %c0_i32_1 = arith.constant 0 : i32
    return %c0_i32, %c0_i32_0 : i32, i32
  }
  func.func @transform_11(%arg0: i32, %arg1: memref<1xi32, #tpu.memory_space<smem>>) -> (i32, i32) {
    %c0_i32 = arith.constant 0 : i32
    %c0_i32_0 = arith.constant 0 : i32
    %c0_i32_1 = arith.constant 0 : i32
    return %c0_i32, %c0_i32_0 : i32, i32
  }
}

</mosaic_0001>

<bundles_post_ra>
// kernel: forward.1
= control target key start
LH: loop header
LB: loop body
LE: loop exit
PB: predicated region body
PF: predicated region fallthrough
CT: control target
= control target key end

     0   :  { %19 = vsyncpa [#allocation6], 0  ;;  %s848_s0 = inlined_call_operand.<no memory space> [shape: s32[1], index: 0, kind: input, shape index: {}]   ;;  %s849_s1 = inlined_call_operand.vmem [shape: f32[2,1], index: 1, kind: input, shape index: {}]   ;;  %s850_s2 = inlined_call_operand.vmem [shape: f32[8,2,1], index: 2, kind: input, shape index: {}]   ;;  %s851_s3 = inlined_call_operand.<no memory space> [shape: f32[1], index: 3, kind: input, shape index: {}]   ;;  %s852_s4 = inlined_call_operand.hbm [shape: f32[3,128], index: 4, kind: input, shape index: {}]   ;;  %s853_s5 = inlined_call_operand.vmem [shape: f32[1,128], index: 5, kind: input, shape index: {}]   ;;  %s854_s6 = inlined_call_operand.hbm [shape: f32[128,128], index: 6, kind: input, shape index: {}]   ;;  %s855_s7 = inlined_call_operand.vmem [shape: f32[1,128], index: 7, kind: input, shape index: {}]   ;;  %s856_s8 = inlined_call_operand.hbm [shape: f32[128,64], index: 8, kind: input, shape index: {}]   ;;  %s857_s9 = inlined_call_operand.vmem [shape: f32[1,64], index: 9, kind: input, shape index: {}]   ;;  %s858_s10 = inlined_call_operand.hbm [shape: f32[64,128], index: 10, kind: input, shape index: {}]   ;;  %s859_s11 = inlined_call_operand.vmem [shape: f32[1,128], index: 11, kind: input, shape index: {}]   ;;  %s860_s12 = inlined_call_operand.vmem [shape: f32[2,128], index: 12, kind: output, shape index: {}]  }
   0x1   :  { %20 = vsyncpa [#allocation8], 0 }
   0x2   :  { %21 = vsyncpa [#allocation11], 0  ;;  %s677_s21 = smov [#allocation7]  }
   0x3   :  { %s51_s22 = sshll.u32 %s677_s21, 4  ;;  %s52_s22 = int_to_ptr.vmem [resolvable:$true] %s51_s22 }
   0x4   :  { %s599_s23 = scalar_lea.vmem %s52_s22, 2048  ;;  %p604_p1 = scmp.lt.s32.totalorder %s52_s22, %s52_s22 }
   0x5   :  { %p600_p0 = scmp.ne.s32.totalorder %s52_s22, %s599_s23  ;;  %p605_p2 = scmp.lt.s32.totalorder %s599_s23, %s599_s23 }
   0x7   :  { %p606_p3 = por %p605_p2, %p604_p1 }
   0x9   :  { %p607_p4 = pnand %p606_p3, %p600_p0 }
   0xb   :  { %610 = shalt.err (!%p607_p4)
}
   0xc   :  { %s678_s24 = smov 128   ;;  %s679_s25 = smov 8  }
   0xd   :  { %57 = dma.hbm_to_vmem [thread:$0]  %s854_s6, 2048, %s52_s22, [#allocation8], %s678_s24, %s678_s24, %s679_s25  }
   0xe   :  { %s680_s28 = smov [#allocation5]   ;;  %s681_s30 = smov [#allocation9]  }
   0xf   :  { %s40_s29 = sshll.u32 %s680_s28, 4  ;;  %s65_s13 = sshll.u32 %s681_s30, 4  ;;  %s41_s29 = int_to_ptr.vmem [resolvable:$true] %s40_s29  ;;  %s66_s13 = int_to_ptr.vmem [resolvable:$true] %s65_s13 }
  0x10   :  { %s619_s14 = scalar_lea.vmem %s41_s29, 64  ;;  %p624_p6 = scmp.lt.s32.totalorder %s41_s29, %s41_s29 }
  0x11   :  { %p620_p5 = scmp.ne.s32.totalorder %s41_s29, %s619_s14  ;;  %p625_p7 = scmp.lt.s32.totalorder %s619_s14, %s619_s14 }
  0x13   :  { %p626_p8 = por %p625_p7, %p624_p6 }
  0x15   :  { %p627_p9 = pnand %p626_p8, %p620_p5 }
  0x17   :  { %630 = shalt.err (!%p627_p9)
}
  0x18   :  { %43 = dma.hbm_to_vmem [thread:$0]  %s852_s4, 64, %s41_s29, [#allocation6]  }
  0x19   :  { %s639_s17 = scalar_lea.vmem %s66_s13, 2048  ;;  %p644_p11 = scmp.lt.s32.totalorder %s66_s13, %s66_s13 }
  0x1a   :  { %p640_p10 = scmp.ne.s32.totalorder %s66_s13, %s639_s17  ;;  %p645_p12 = scmp.lt.s32.totalorder %s639_s17, %s639_s17 }
  0x1c   :  { %p646_p13 = por %p645_p12, %p644_p11 }
  0x1e   :  { %p647_p0 = pnand %p646_p13, %p640_p10 }
  0x20   :  { %650 = shalt.err (!%p647_p0)
}
  0x21   :  { %71 = dma.hbm_to_vmem [thread:$0]  %s856_s8, 2048, %s66_s13, [#allocation8], %s678_s24, %s678_s24, %s679_s25  }
  0x22   :  { %s682_s19 = smov [#allocation10]  }
  0x23   :  { %s79_s20 = sshll.u32 %s682_s19, 4  ;;  %s80_s20 = int_to_ptr.vmem [resolvable:$true] %s79_s20 }
  0x24   :  { %s659_s21 = scalar_lea.vmem %s80_s20, 1024  ;;  %p664_p2 = scmp.lt.s32.totalorder %s80_s20, %s80_s20 }
  0x25   :  { %p660_p1 = scmp.ne.s32.totalorder %s80_s20, %s659_s21  ;;  %p665_p3 = scmp.lt.s32.totalorder %s659_s21, %s659_s21 }
  0x27   :  { %p666_p4 = por %p665_p3, %p664_p2 }
  0x29   :  { %p667_p5 = pnand %p666_p4, %p660_p1 }
  0x2b   :  { %670 = shalt.err (!%p667_p5)
}
  0x2c   :  { %85 = dma.hbm_to_vmem [thread:$0]  %s858_s10, 1024, %s80_s20, [#allocation11], %s678_s24, %s678_s24, %s679_s25  }
  0x2d   :  { %671 = dma.done.wait [#allocation6], 64  }
  0x2e   :  { %672 = vsyncadd [#allocation6], 4294967232 }
  0x2f   :  { %673 = dma.done.wait [#allocation8], 4096  }
  0x30   :  { %674 = vsyncadd [#allocation8], 4294963200 }
  0x31   :  { %675 = dma.done.wait [#allocation11], 1024  }
  0x32   :  { %676 = vsyncadd [#allocation11], 4294966272  ;;  %p106_p6 = scmp.lt.s32.totalorder %s848_s0, 7  ;;  %v683_v0 = vmov 0   ;;  %v684_v1 = vmov 0.0   ;;  %v167_v3 = vld [vmem:[#allocation7 + $0x78] sm:$0xff]  ;;  %v120_v33 = vlaneseq  ;;  %v136_v38 = vstv %s851_s3 }
  0x33   :  { %590 = vset.pattern.permute.xlu0 %v683_v0  ;;  %492 = vmatprep.subr.mxu0 %v684_v1  ;;  %v111_v2 = vld [vmem:[%s849_s1] sm:$0x3]  ;;  %v166_v4 = vld [vmem:[#allocation7 + $0x70] sm:$0xff]  ;;  %v165_v6 = vld [vmem:[#allocation7 + $0x68] sm:$0xff]  ;;  %vm685_vm0 = vmmov 0   ;;  %vm355_vm1 = vcmask 523264  }
  0x34   :  { %s862_s0 = smov (!%p106_p6, %s848_s0), 7  ;;  %527 = vmatprep.subr.mxu1 %v684_v1  ;;  %117 = vperm.xlu0 %590, %v111_v2   ;;  %v164_v7 = vld [vmem:[#allocation7 + $0x60] sm:$0xff]  ;;  %v163_v8 = vld [vmem:[#allocation7 + $0x58] sm:$0xff]  ;;  %v162_v9 = vld [vmem:[#allocation7 + $0x50] sm:$0xff]  ;;  %v121_v34 = vshrl.u32 %v120_v33, 7 }
  0x35   :  { %s443_s10 = sshll.u32 %s862_s0, 1  ;;  %493 = vmatpush3.msra.mxu0 %v167_v3  ;;  %524 = vmatprep.mubr.msk.f32.mxu0 %vm685_vm0, %v684_v1  ;;  %v161_v10 = vld [vmem:[#allocation7 + $0x48] sm:$0xff]  ;;  %v261_v11 = vld [vmem:[#allocation9 + $0x78] sm:$0xff]  ;;  %v260_v12 = vld [vmem:[#allocation9 + $0x70] sm:$0xff] }
  0x36   :  { %s109_s28 = scalar_lea.vmem %s850_s2, %s443_s10  ;;  %494 = vmatprep.subr.mxu0 %v684_v1  ;;  %559 = vmatprep.mubr.msk.f32.mxu1 %vm685_vm0, %v684_v1  ;;  %v160_v13 = vld [vmem:[#allocation7 + $0x40] sm:$0xff]  ;;  %v259_v14 = vld [vmem:[#allocation9 + $0x68] sm:$0xff]  ;;  %v159_v15 = vld [vmem:[#allocation7 + $0x38] sm:$0xff]  ;;  %v122_v35 = vsub.s32 0, %v121_v34  ;;  %v132_v36 = vsub.s32 1, %v121_v34  ;;  %v140_v43 = vsub.s32 2, %v121_v34 }
  0x37   :  { %v112_v5 = vld [vmem:[%s109_s28] sm:$0x3]  ;;  %495 = vmatpush3.msra.mxu0 %v166_v4  ;;  %528 = vmatpush3.msra.mxu1 %v261_v11  ;;  %v258_v16 = vld [vmem:[#allocation9 + $0x60] sm:$0xff]  ;;  %v158_v17 = vld [vmem:[#allocation7 + $0x30] sm:$0xff] }
  0x38   :  { %496 = vmatprep.subr.mxu0 %v684_v1  ;;  %127 = vperm.xlu0 %590, %v112_v5   ;;  %v257_v18 = vld [vmem:[#allocation9 + $0x58] sm:$0xff]  ;;  %v157_v19 = vld [vmem:[#allocation7 + $0x28] sm:$0xff]  ;;  %v256_v20 = vld [vmem:[#allocation9 + $0x50] sm:$0xff] }
  0x39   :  { %497 = vmatpush3.msra.mxu0 %v165_v6  ;;  %529 = vmatprep.subr.mxu1 %v684_v1  ;;  %v156_v21 = vld [vmem:[#allocation7 + $0x20] sm:$0xff]  ;;  %v255_v22 = vld [vmem:[#allocation9 + $0x48] sm:$0xff]  ;;  %v155_v23 = vld [vmem:[#allocation7 + $0x18] sm:$0xff] }
  0x3a   :  { %498 = vmatprep.subr.mxu0 %v684_v1  ;;  %530 = vmatpush3.msra.mxu1 %v260_v12  ;;  %v254_v24 = vld [vmem:[#allocation9 + $0x40] sm:$0xff]  ;;  %v154_v25 = vld [vmem:[#allocation7 + $0x10] sm:$0xff]  ;;  %v253_v26 = vld [vmem:[#allocation9 + $0x38] sm:$0xff] }
  0x3b   :  { %499 = vmatpush3.msra.mxu0 %v164_v7  ;;  %531 = vmatprep.subr.mxu1 %v684_v1  ;;  %v153_v27 = vld [vmem:[#allocation7 + $0x8] sm:$0xff]  ;;  %v252_v28 = vld [vmem:[#allocation9 + $0x30] sm:$0xff]  ;;  %v152_v29 = vld [vmem:[#allocation7] sm:$0xff] }
  0x3c   :  { %500 = vmatprep.subr.mxu0 %v684_v1  ;;  %532 = vmatpush3.msra.mxu1 %v259_v14  ;;  %v251_v30 = vld [vmem:[#allocation9 + $0x28] sm:$0xff]  ;;  %v250_v31 = vld [vmem:[#allocation9 + $0x20] sm:$0xff]  ;;  %v249_v32 = vld [vmem:[#allocation9 + $0x18] sm:$0xff] }
  0x3d   :  { %501 = vmatpush3.msra.mxu0 %v163_v8  ;;  %533 = vmatprep.subr.mxu1 %v684_v1  ;;  %v114_v37 = vld [vmem:[#allocation5] sm:$0x7]  ;;  %v248_v53 = vld [vmem:[#allocation9 + $0x10] sm:$0xff]  ;;  %v247_v54 = vld [vmem:[#allocation9 + $0x8] sm:$0xff] }
  0x3e   :  { %502 = vmatprep.subr.mxu0 %v684_v1  ;;  %534 = vmatpush3.msra.mxu1 %v258_v16  ;;  %v123_v40 = vrot.slane %v114_v37, %v122_v35  ;;  %v137_v41 = vmul.f32 %v136_v38, %v114_v37  ;;  %v133_v42 = vrot.slane %v114_v37, %v132_v36  ;;  %v444_v49 = vld [vmem:[%s853_s5] ss:$0 sm:$0xff]  ;;  %v246_v55 = vld [vmem:[#allocation9] sm:$0xff]  ;;  %v346_v57 = vld [vmem:[#allocation10 + $0x30] sm:$0xff] }
  0x3f   :  { %503 = vmatpush3.msra.mxu0 %v162_v9  ;;  %535 = vmatprep.subr.mxu1 %v684_v1  ;;  %v347_v56 = vld [vmem:[#allocation10 + $0x38] sm:$0xff]  ;;  %v345_v58 = vld [vmem:[#allocation10 + $0x28] sm:$0xff]  ;;  %v344_v59 = vld [vmem:[#allocation10 + $0x20] sm:$0xff] }
  0x40   :  { %504 = vmatprep.subr.mxu0 %v684_v1  ;;  %536 = vmatpush3.msra.mxu1 %v257_v18  ;;  %v141_v46 = vrot.slane %v137_v41, %v140_v43  ;;  %v343_v60 = vld [vmem:[#allocation10 + $0x18] sm:$0xff]  ;;  %v342_v3 = vld [vmem:[#allocation10 + $0x10] sm:$0xff]  ;;  %v341_v4 = vld [vmem:[#allocation10 + $0x8] sm:$0xff] }
  0x41   :  { %505 = vmatpush3.msra.mxu0 %v161_v10  ;;  %537 = vmatprep.subr.mxu1 %v684_v1  ;;  %v445_v61 = vld [vmem:[%s855_s7] ss:$0 sm:$0xff]  ;;  %v340_v5 = vld [vmem:[#allocation10] sm:$0xff] }
  0x42   :  { %506 = vmatprep.subr.mxu0 %v684_v1  ;;  %538 = vmatpush3.msra.mxu1 %v256_v20  ;;  %v446_v6 = vld [vmem:[%s857_s9] ss:$0 sm:$0xff] }
  0x43   :  { %507 = vmatpush3.msra.mxu0 %v160_v13  ;;  %539 = vmatprep.subr.mxu1 %v684_v1  ;;  %v447_v11 = vld [vmem:[%s859_s11] ss:$0 sm:$0xff] }
  0x44   :  { %508 = vmatprep.subr.mxu0 %v684_v1  ;;  %540 = vmatpush3.msra.mxu1 %v255_v22 }
  0x45   :  { %509 = vmatpush3.msra.mxu0 %v159_v15  ;;  %541 = vmatprep.subr.mxu1 %v684_v1 }
  0x46   :  { %510 = vmatprep.subr.mxu0 %v684_v1  ;;  %542 = vmatpush3.msra.mxu1 %v254_v24 }
  0x47   :  { %511 = vmatpush3.msra.mxu0 %v158_v17  ;;  %543 = vmatprep.subr.mxu1 %v684_v1 }
  0x48   :  { %512 = vmatprep.subr.mxu0 %v684_v1  ;;  %544 = vmatpush3.msra.mxu1 %v253_v26 }
  0x49   :  { %513 = vmatpush3.msra.mxu0 %v157_v19  ;;  %545 = vmatprep.subr.mxu1 %v684_v1 }
  0x4a   :  { %514 = vmatprep.subr.mxu0 %v684_v1  ;;  %546 = vmatpush3.msra.mxu1 %v252_v28 }
  0x4b   :  { %515 = vmatpush3.msra.mxu0 %v156_v21  ;;  %547 = vmatprep.subr.mxu1 %v684_v1 }
  0x4c   :  { %516 = vmatprep.subr.mxu0 %v684_v1  ;;  %548 = vmatpush3.msra.mxu1 %v251_v30 }
  0x4d   :  { %517 = vmatpush3.msra.mxu0 %v155_v23  ;;  %549 = vmatprep.subr.mxu1 %v684_v1 }
  0x4e   :  { %518 = vmatprep.subr.mxu0 %v684_v1  ;;  %550 = vmatpush3.msra.mxu1 %v250_v31 }
  0x4f   :  { %519 = vmatpush3.msra.mxu0 %v154_v25  ;;  %551 = vmatprep.subr.mxu1 %v684_v1 }
  0x50   :  { %520 = vmatprep.subr.mxu0 %v684_v1  ;;  %552 = vmatpush3.msra.mxu1 %v249_v32 }
  0x51   :  { %521 = vmatpush3.msra.mxu0 %v153_v27  ;;  %553 = vmatprep.subr.mxu1 %v684_v1 }
  0x52   :  { %522 = vmatprep.subr.mxu0 %v684_v1  ;;  %554 = vmatpush3.msra.mxu1 %v248_v53 }
  0x53   :  { %523 = vmatpush3.msra.mxu0 %v152_v29  ;;  %555 = vmatprep.subr.mxu1 %v684_v1 }
  0x54   :  { %562 = vmatprep.subr.mxu0 %v684_v1  ;;  %556 = vmatpush3.msra.mxu1 %v247_v54 }
  0x55   :  { %557 = vmatprep.subr.mxu1 %v684_v1 }
  0x56   :  { %558 = vmatpush3.msra.mxu1 %v246_v55 }
  0xaf   :  { %v118_v39 = vpop.permute.xlu0 %117 }
  0xb0   :  { %v124_v45 = vmul.f32 %v123_v40, %v118_v39 }
  0xb3   :  { %v128_v44 = vpop.permute.xlu0 %127 }
  0xb4   :  { %v134_v47 = vmul.f32 %v133_v42, %v128_v44 }
  0xb6   :  { %v135_v48 = vadd.f32 %v134_v47, %v124_v45 }
  0xb8   :  { %v142_v50 = vadd.f32 %v141_v46, %v135_v48 }
  0xba   :  { %v150_v51 = vadd.f32 %v444_v49, %v142_v50 }
  0xbc   :  { %v151_v52 = vmax.f32 %v150_v51, 0.0 }
  0xbe   :  { %525 = vmatmul.mubr.f32.vlgmr.msra.gmra.mxu0 %v151_v52 }
  0xbf   :  { %578 = vmatprep.mubr.msk.f32.mxu0 %vm685_vm0, %v684_v1  ;;  %563 = vmatpush3.msra.mxu0 %v347_v56 }
  0xc0   :  { %564 = vmatprep.subr.mxu0 %v684_v1 }
  0xc1   :  { %565 = vmatpush3.msra.mxu0 %v346_v57 }
  0xc2   :  { %566 = vmatprep.subr.mxu0 %v684_v1 }
  0xc3   :  { %567 = vmatpush3.msra.mxu0 %v345_v58 }
  0xc4   :  { %568 = vmatprep.subr.mxu0 %v684_v1 }
  0xc5   :  { %569 = vmatpush3.msra.mxu0 %v344_v59 }
  0xc6   :  { %570 = vmatprep.subr.mxu0 %v684_v1 }
  0xc7   :  { %571 = vmatpush3.msra.mxu0 %v343_v60 }
  0xc8   :  { %572 = vmatprep.subr.mxu0 %v684_v1 }
  0xc9   :  { %573 = vmatpush3.msra.mxu0 %v342_v3 }
  0xca   :  { %574 = vmatprep.subr.mxu0 %v684_v1 }
  0xcb   :  { %575 = vmatpush3.msra.mxu0 %v341_v4 }
  0xcc   :  { %576 = vmatprep.subr.mxu0 %v684_v1 }
  0xcd   :  { %577 = vmatpush3.msra.mxu0 %v340_v5 }
 0x17e   :  { %v241_v62 = vpop.f32.mrf.mxu0 }
 0x17f   :  { %v242_v63 = vadd.f32 %v445_v61, %v241_v62 }
 0x180   :  { %v526_v0 = vpop.f32.mrf.mxu0 }
 0x181   :  { %v245_v2 = vmax.f32 %v242_v63, 0.0 }
 0x183   :  { %560 = vmatmul.mubr.f32.vlgmr.msra.gmra.mxu1 %v245_v2 }
 0x243   :  { %v335_v7 = vpop.f32.mrf.mxu1 }
 0x244   :  { %v336_v8 = vadd.f32 %v446_v6, %v335_v7 }
 0x245   :  { %v561_v9 = vpop.f32.mrf.mxu1 }
 0x246   :  { %v339_v10 = vmax.f32 %v336_v8, 0.0 }
 0x248   :  { %579 = vmatmul.mubr.msk.f32.vlgmr.msra.gmra.mxu0 %vm355_vm1, %v339_v10 }
 0x308   :  { %v425_v12 = vpop.f32.mrf.mxu0 }
 0x309   :  { %v426_v13 = vadd.f32 %v447_v11, %v425_v12 }
 0x30a   :  { %v580_v14 = vpop.f32.mrf.mxu0 }
 0x30b   :  { %429 = vst [vmem:[%s860_s12] sm:$0x3] %v426_v13 }
 0x30c   :  { %434 = vsyncpa [#allocation6], 1 }
 0x30d   :  { %435 = vsyncpa [#allocation8], 1 }
 0x30e   :  { %436 = vsyncpa [#allocation11], 1 }

</bundles_post_ra>
